<compile_context>
chip_gen: v6e
topology: v6e:2x2x1
jax: 0.10.0
libtpu: 0.0.40
codegen_flags: <defaults>
</compile_context>

<pallas_src>
import jax
import jax.numpy as jnp
from jax.experimental import pallas as pl
from jax.experimental.pallas import tpu as pltpu


def _head_kernel(x_ref, w_ref, out_ref):
    # x_ref:   (T, C) bf16 tile for one batch element (batch dim squeezed away)
    # w_ref:   (3, C, H) bf16 weights, order K | Q | V, resident across steps
    # out_ref: (T, H) f32
    T, C = x_ref.shape
    H = out_ref.shape[-1]

    x = x_ref[...]  # bf16 (T, C)

    # Three small projections against the leading-axis-split weight — avoids
    # lane-misaligned slicing of a fused (T, 3H) result. f32 accumulation.
    k = jnp.dot(x, w_ref[0], preferred_element_type=jnp.float32)  # (T, H) f32
    q = jnp.dot(x, w_ref[1], preferred_element_type=jnp.float32)  # (T, H) f32
    v = jnp.dot(x, w_ref[2], preferred_element_type=jnp.float32)  # (T, H) f32

    # Fold the C**-0.5 scale (n_embd scaling, exactly as the PyTorch module)
    # into q in f32, then feed the MXU bf16 operands.
    scale = jnp.float32(C ** -0.5)
    q = (q * scale).astype(jnp.bfloat16)
    k = k.astype(jnp.bfloat16)

    # Attention scores: contract on H directly — no explicit k transpose is
    # materialized. Result accumulates in f32.
    wei = jnp.einsum("td,sd->ts", q, k,
                     preferred_element_type=jnp.float32)  # (T, T) f32

    # Causal mask from 2-D iotas: keep positions where key index <= query index.
    row = jax.lax.broadcasted_iota(jnp.int32, (T, T), 0)
    col = jax.lax.broadcasted_iota(jnp.int32, (T, T), 1)
    wei = jnp.where(col <= row, wei, -jnp.inf)

    # Softmax along the key axis — all math in f32, exact divide for parity.
    m = jnp.max(wei, axis=-1, keepdims=True)
    e = jnp.exp(wei - m)
    denom = jnp.sum(e, axis=-1, keepdims=True)
    p = e / denom

    # dropout: identity (eval mode)

    # PV matmul: bf16 operands, f32 accumulation; single whole-tile store.
    out = jnp.dot(p.astype(jnp.bfloat16), v.astype(jnp.bfloat16),
                  preferred_element_type=jnp.float32)  # (T, H) f32
    out_ref[...] = out.astype(out_ref.dtype)


def head_forward(x, wk, wq, wv):
    """x: (B, T, C) float32; wk/wq/wv: (C, H) float32. Returns (B, T, H) f32.

    Weights are stored as (C, H) so k = x @ Wk matches nn.Linear(x) with
    weight.T = Wk (nn.Linear stores (H, C)).
    """
    B, T, C = x.shape
    H = wk.shape[1]

    # bf16 operands for the MXU; halves HBM DMA bytes as well.
    x_bf16 = x.astype(jnp.bfloat16)
    w_qkv = jnp.stack([wk, wq, wv], axis=0).astype(jnp.bfloat16)  # (3, C, H)

    flops = B * (3 * 2 * T * C * H          # QKV projections
                 + 2 * T * T * H            # Q @ K^T
                 + 2 * T * T * H)           # P @ V
    cost = pl.CostEstimate(
        flops=flops,
        transcendentals=B * T * T,           # exp in softmax
        bytes_accessed=(x_bf16.size * 2 + w_qkv.size * 2 + B * T * H * 4),
    )

    return pl.pallas_call(
        _head_kernel,
        out_shape=jax.ShapeDtypeStruct((B, T, H), jnp.float32),
        grid=(B,),
        in_specs=[
            # batch dim squeezed -> kernel sees a clean 2-D (T, C) tile
            pl.BlockSpec((None, T, C), lambda b: (b, 0, 0)),
            # constant index_map: weights stay resident in VMEM across steps
            pl.BlockSpec((3, C, H), lambda b: (0, 0, 0)),
        ],
        out_specs=pl.BlockSpec((None, T, H), lambda b: (b, 0, 0)),
        compiler_params=pltpu.CompilerParams(
            dimension_semantics=("parallel",)),
        cost_estimate=cost,
    )(x_bf16, w_qkv)


def reference_forward(x, wk, wq, wv):
    """Pure-JAX f32 reference with identical (eval-mode) semantics."""
    B, T, C = x.shape
    k = x @ wk
    q = x @ wq
    v = x @ wv
    wei = jnp.einsum("btd,bsd->bts", q, k) * (C ** -0.5)
    tril = jnp.tril(jnp.ones((T, T), dtype=bool))
    wei = jnp.where(tril, wei, -jnp.inf)
    wei = jax.nn.softmax(wei, axis=-1)
    return wei @ v


if __name__ == "__main__":
    # module hyperparameters
    n_embd = 32
    head_size = 16
    block_size = 8   # max sequence length (tril buffer size)
    dropout = 0.1    # unused in eval-mode forward

    B, T, C = 2, block_size, n_embd

    key = jax.random.PRNGKey(0)
    kx, kk, kq, kv = jax.random.split(key, 4)

    x = jax.random.normal(kx, (B, T, C), dtype=jnp.float32)
    # deterministic "linear" weights, stored as (C, head_size)
    wk = jax.random.normal(kk, (C, head_size), dtype=jnp.float32) * 0.05
    wq = jax.random.normal(kq, (C, head_size), dtype=jnp.float32) * 0.05
    wv = jax.random.normal(kv, (C, head_size), dtype=jnp.float32) * 0.05

    out = head_forward(x, wk, wq, wv)
    out = jax.block_until_ready(out)

    ref = reference_forward(x, wk, wq, wv)
    assert out.shape == (B, T, head_size)
    # tolerance relaxed because matmul operands are bf16 (f32 accumulation,
    # f32 softmax); reference is pure f32.
    assert jnp.allclose(out, ref, atol=3e-2, rtol=3e-2), "mismatch vs reference"

    print("KERNEL_OK")
</pallas_src>

<mosaic_0001>
module attributes {stable_mosaic.version = 11 : i64} {
  func.func @_head_kernel(%arg0: i32, %arg1: memref<1x8x32xbf16, #tpu.memory_space<vmem>>, %arg2: memref<3x32x16xbf16, #tpu.memory_space<vmem>>, %arg3: memref<1x8x16xf32, #tpu.memory_space<vmem>>) attributes {dimension_semantics = [#tpu.dimension_semantics<parallel>], iteration_bounds = array<i64: 2>, scalar_prefetch = 0 : i64, scratch_operands = 0 : i64, tpu.core_type = #tpu.core_type<tc>, window_params = [{transform_indices = @transform_0, window_bounds = array<i64: 1, 8, 32>}, {pipeline_mode = #tpu.pipeline_mode<synchronous>, transform_indices = @transform_1, window_bounds = array<i64: 3, 32, 16>}, {transform_indices = @transform_2, window_bounds = array<i64: 1, 8, 16>}]} {
    %c0 = arith.constant 0 : index
    %c0_0 = arith.constant 0 : index
    %c0_1 = arith.constant 0 : index
    %0 = vector.load %arg1[%c0, %c0_0, %c0_1] : memref<1x8x32xbf16, #tpu.memory_space<vmem>>, vector<1x8x32xbf16>
    %1 = vector.shape_cast %0 : vector<1x8x32xbf16> to vector<8x32xbf16>
    %c0_2 = arith.constant 0 : index
    %c0_3 = arith.constant 0 : index
    %c0_4 = arith.constant 0 : index
    %2 = vector.load %arg2[%c0_2, %c0_3, %c0_4] : memref<3x32x16xbf16, #tpu.memory_space<vmem>>, vector<1x32x16xbf16>
    %3 = vector.shape_cast %2 : vector<1x32x16xbf16> to vector<32x16xbf16>
    %cst = arith.constant dense<0.000000e+00> : vector<8x16xf32>
    %4 = tpu.matmul %1, %3, %cst {dimension_numbers = #tpu.dot_dimension_numbers<[1], [0], [0], [1], [0, 0, 1, 1], [], []>} : vector<8x32xbf16>, vector<32x16xbf16>, vector<8x16xf32> -> vector<8x16xf32>
    %c1 = arith.constant 1 : index
    %c0_5 = arith.constant 0 : index
    %c0_6 = arith.constant 0 : index
    %5 = vector.load %arg2[%c1, %c0_5, %c0_6] : memref<3x32x16xbf16, #tpu.memory_space<vmem>>, vector<1x32x16xbf16>
    %6 = vector.shape_cast %5 : vector<1x32x16xbf16> to vector<32x16xbf16>
    %cst_7 = arith.constant dense<0.000000e+00> : vector<8x16xf32>
    %7 = tpu.matmul %1, %6, %cst_7 {dimension_numbers = #tpu.dot_dimension_numbers<[1], [0], [0], [1], [0, 0, 1, 1], [], []>} : vector<8x32xbf16>, vector<32x16xbf16>, vector<8x16xf32> -> vector<8x16xf32>
    %c2 = arith.constant 2 : index
    %c0_8 = arith.constant 0 : index
    %c0_9 = arith.constant 0 : index
    %8 = vector.load %arg2[%c2, %c0_8, %c0_9] : memref<3x32x16xbf16, #tpu.memory_space<vmem>>, vector<1x32x16xbf16>
    %9 = vector.shape_cast %8 : vector<1x32x16xbf16> to vector<32x16xbf16>
    %cst_10 = arith.constant dense<0.000000e+00> : vector<8x16xf32>
    %10 = tpu.matmul %1, %9, %cst_10 {dimension_numbers = #tpu.dot_dimension_numbers<[1], [0], [0], [1], [0, 0, 1, 1], [], []>} : vector<8x32xbf16>, vector<32x16xbf16>, vector<8x16xf32> -> vector<8x16xf32>
    %cst_11 = arith.constant 0.176776692 : f32
    %11 = vector.broadcast %cst_11 : f32 to vector<8x16xf32>
    %12 = arith.mulf %7, %11 : vector<8x16xf32>
    %13 = arith.truncf %12 : vector<8x16xf32> to vector<8x16xbf16>
    %14 = arith.truncf %4 : vector<8x16xf32> to vector<8x16xbf16>
    "tpu.trace_start"() <{level = 10 : i32, message = "td,sd->ts"}> : () -> ()
    %cst_12 = arith.constant dense<0.000000e+00> : vector<8x8xf32>
    %15 = tpu.matmul %13, %14, %cst_12 {dimension_numbers = #tpu.dot_dimension_numbers<[1], [1], [0], [0], [0, 0, 1, 0], [], []>} : vector<8x16xbf16>, vector<8x16xbf16>, vector<8x8xf32> -> vector<8x8xf32>
    "tpu.trace_stop"() : () -> ()
    %16 = tpu.iota {dimensions = array<i32: 0>} : vector<8x8xi32>
    %17 = tpu.iota {dimensions = array<i32: 1>} : vector<8x8xi32>
    %18 = arith.cmpi sle, %17, %16 : vector<8x8xi32>
    %cst_13 = arith.constant 0xFF800000 : f32
    %19 = vector.broadcast %cst_13 : f32 to vector<8x8xf32>
    %20 = arith.select %18, %15, %19 : vector<8x8xi1>, vector<8x8xf32>
    %cst_14 = arith.constant dense<0xFF800000> : vector<8xf32>
    %21 = vector.multi_reduction <maximumf>, %20, %cst_14 [1] : vector<8x8xf32> to vector<8xf32>
    %22 = vector.shape_cast %21 : vector<8xf32> to vector<8x1xf32>
    %23 = vector.broadcast %22 : vector<8x1xf32> to vector<8x8xf32>
    %24 = arith.subf %20, %23 : vector<8x8xf32>
    %25 = math.exp %24 : vector<8x8xf32>
    %cst_15 = arith.constant dense<0.000000e+00> : vector<8xf32>
    %26 = vector.multi_reduction <add>, %25, %cst_15 [1] : vector<8x8xf32> to vector<8xf32>
    %27 = vector.shape_cast %26 : vector<8xf32> to vector<8x1xf32>
    %28 = vector.broadcast %27 : vector<8x1xf32> to vector<8x8xf32>
    %29 = arith.divf %25, %28 : vector<8x8xf32>
    %30 = arith.truncf %29 : vector<8x8xf32> to vector<8x8xbf16>
    %31 = arith.truncf %10 : vector<8x16xf32> to vector<8x16xbf16>
    %cst_16 = arith.constant dense<0.000000e+00> : vector<8x16xf32>
    %32 = tpu.matmul %30, %31, %cst_16 {dimension_numbers = #tpu.dot_dimension_numbers<[1], [0], [0], [1], [0, 0, 1, 1], [], []>} : vector<8x8xbf16>, vector<8x16xbf16>, vector<8x16xf32> -> vector<8x16xf32>
    %c0_17 = arith.constant 0 : index
    %c0_18 = arith.constant 0 : index
    %c0_19 = arith.constant 0 : index
    %33 = vector.load %arg3[%c0_17, %c0_18, %c0_19] : memref<1x8x16xf32, #tpu.memory_space<vmem>>, vector<1x8x16xf32>
    %34 = vector.shape_cast %33 : vector<1x8x16xf32> to vector<8x16xf32>
    %35 = vector.shape_cast %32 : vector<8x16xf32> to vector<1x8x16xf32>
    tpu.vector_store %arg3[%c0_17, %c0_18, %c0_19], %35 {strides = array<i32>} : memref<1x8x16xf32, #tpu.memory_space<vmem>>, vector<1x8x16xf32>,
    return
  }
  func.func @transform_0(%arg0: i32) -> (i32, i32, i32) {
    %c0_i32 = arith.constant 0 : i32
    %c0_i32_0 = arith.constant 0 : i32
    %c0_i32_1 = arith.constant 0 : i32
    return %arg0, %c0_i32, %c0_i32_0 : i32, i32, i32
  }
  func.func @transform_1(%arg0: i32) -> (i32, i32, i32) {
    %c0_i32 = arith.constant 0 : i32
    %c0_i32_0 = arith.constant 0 : i32
    %c0_i32_1 = arith.constant 0 : i32
    %c0_i32_2 = arith.constant 0 : i32
    return %c0_i32, %c0_i32_0, %c0_i32_1 : i32, i32, i32
  }
  func.func @transform_2(%arg0: i32) -> (i32, i32, i32) {
    %c0_i32 = arith.constant 0 : i32
    %c0_i32_0 = arith.constant 0 : i32
    %c0_i32_1 = arith.constant 0 : i32
    return %arg0, %c0_i32, %c0_i32_0 : i32, i32, i32
  }
}

</mosaic_0001>

<bundles_post_ra>
// kernel: tpu_custom_call.1
= control target key start
LH: loop header
LB: loop body
LE: loop exit
PB: predicated region body
PF: predicated region fallthrough
CT: control target
= control target key end

     0   :  { %7 = vsyncpa [#allocation3], 0  ;;  %s846_s0 = inlined_call_operand.vmem [shape: bf16[2,8,32], index: 0, kind: input, shape index: {}]   ;;  %s847_s1 = inlined_call_operand.vmem [shape: bf16[3,32,16], index: 1, kind: input, shape index: {}]   ;;  %s848_s2 = inlined_call_operand.hbm [shape: f32[2,8,16], index: 2, kind: output, shape index: {}]  }
   0x1   :  { %9 = vsyncpa [#allocation3 + $0x1], 0  ;;  %s715_s9 = smov 0   ;;  %s717_s10 = smov 0  }
   0x2   :  { %s719_s11 = smov 0   ;;  %s721_s12 = smov 0  }
   0x3 LB: > { %s736_s13 = sadd.s32 4294967295, %s695_s12   ;;  %s506_s14 = sadd.s32 4294967294, %s695_s12   ;;  %s695_s12 = sphi %s721_s12, %s854_s12   ;;  %s691_s11 = sphi %s719_s11, %s853_s11   ;;  %s687_s10 = sphi %s717_s10, %s852_s10   ;;  %s683_s9 = sphi %s715_s9, %s851_s9  }
   0x4   : > { %s740_s15 = sadd.s32 1, %s695_s12   ;;  %s69_s16 = sadd.s32 1, %s691_s11 }
   0x5   : > { %s66_s17 = ssub.s32 %s695_s12, %s740_s15  ;;  %p79_p0 = scmp.ne.s32.totalorder %s691_s11, %s687_s10 }
   0x6   : > { %p67_p1 = scmp.eq.s32.totalorder %s66_s17, 0  ;;  %p80_p2 = scmp.eq.s32.totalorder %s736_s13, 1 }
   0x7   : > { %p85_p3 = scmp.ne.s32.totalorder %s687_s10, %s683_s9  ;;  %p86_p4 = scmp.eq.s32.totalorder %s506_s14, 1 }
   0x8   : > { %s751_s18 = scalar_select %p67_p1, %s691_s11, %s69_s16  }
   0x9   : > { %p753_p5 = por %p80_p2, %p79_p0  ;;  %p757_p6 = por %p86_p4, %p85_p3 }
   0xa   : > { %p509_p7 = scmp.ge.s32.totalorder %s695_s12, 1  ;;  %p114_p8 = scmp.lt.s32.totalorder %s695_s12, 3 }
   0xc   : > { %p115_p9 = pnand %p509_p7, %p114_p8 }
   0xd   : > { %p135_p10 = scmp.lt.s32.totalorder (!%p115_p9), %s736_s13, 1  ;;  %s132_s16 = sand.u32 (!%p115_p9), 1, %s687_s10  }
   0xe   : > { %118 = sbr.rel (%p115_p9) target bundleno = 948 (0x3b4), region = 28  ;;  %s510_s17 = sshll.u32 (!%p115_p9), %s132_s16, 3 }
   0xf   : > { %s532_s21 = sshll.u32 (!%p115_p9), %s736_s13, 7  ;;  %s134_s22 = scalar_lea.vmem (!%p115_p9), [#allocation2], %s510_s17 }
  0x10   : > { %s447_s23 = sshll.u32 (!%p115_p9), %s134_s22, 4  ;;  %s804_s26 = scalar_lea.hbm (!%p115_p9), %s848_s2, %s532_s21  ;;  %s806_s23 = int_to_ptr.vmem [resolvable:$true] %s447_s23 }
  0x11   : > { %s434_s27 = scalar_lea.sflag (!%p115_p9), [#allocation3], %s132_s16  ;;  %s635_s28 = scalar_lea.vmem (!%p115_p9), %s806_s23, 128 }
  0x12   : > { %p636_p11 = scmp.ne.s32.totalorder (!%p115_p9), %s806_s23, %s635_s28 }
  0x13   : > { %v625_v0 = vld [vmem:[%s847_s1 + $0x8] sm:$0xff]   ;;  %v697_v1 = vmov 0.0   ;;  %v626_v2 = vld [vmem:[%s847_s1 + $0x18] sm:$0xff]   ;;  %v627_v3 = vld [vmem:[%s847_s1] sm:$0xff]   ;;  %vm698_vm0 = vmmov 0   ;;  %s136_s29 = scalar_select %p135_p10, %s736_s13, 1  ;;  %v365_v20 = vlaneseq }
  0x14   : > { %548 = vmatprep.subr.bf16.mxu0 %v697_v1  ;;  %556 = vmatprep.subr.bf16.mxu1 %v697_v1  ;;  %v628_v4 = vld [vmem:[%s847_s1 + $0x10] sm:$0xff]   ;;  %vm157_vm1 = vcmask 261120   ;;  %vm318_vm2 = vcmask 130048   ;;  %v629_v18 = vld [vmem:[%s847_s1 + $0x28] sm:$0xff]   ;;  %v630_v19 = vld [vmem:[%s847_s1 + $0x20] sm:$0xff]   ;;  %vm371_vm4 = vcmask 64512   ;;  %p637_p12 = pnand %p636_p11, %p753_p5 }
  0x15   : > { %549 = vmatpush3.bf16.msra.mxu0 %v625_v0  ;;  %552 = vmatprep.mubr.msk.bf16.mxu0 %vm698_vm0, %v697_v1  ;;  %s511_s30 = sshll.u32 %s136_s29, 2  ;;  %v366_v21 = vshrl.u32 %v365_v20, 7  ;;  %v368_v22 = vand.u32 127, %v365_v20  ;;  %vm388_vm5 = vcmask 1043456   ;;  %s699_s13 = smov [#allocation2]  }
  0x16   : > { %557 = vmatpush3.bf16.msra.mxu1 %v626_v2  ;;  %550 = vmatprep.subr.bf16.mxu0 %v697_v1  ;;  %s138_s5 = scalar_lea.vmem %s846_s0, %s511_s30  ;;  %p638_p13 = pneg %p637_p12 }
  0x17   : > { %558 = vmatprep.subr.bf16.mxu1 %v697_v1  ;;  %560 = vmatprep.mubr.msk.bf16.mxu1 %vm698_vm0, %v697_v1  ;;  %v140_v5 = vld [vmem:[%s138_s5] sm:$0xf]  ;;  %vm369_vm3 = vcmp.le.s32.totalorder %v368_v22, %v366_v21  ;;  %s639_s29 = sshll.u32 %s699_s13, 4  ;;  %s640_s29 = int_to_ptr.vmem [resolvable:$false] %s639_s29 }
  0x18   : > { %s641_s30 = scalar_lea.vmem %s640_s29, 256  ;;  %p642_p0 = scmp.lt.s32.totalorder %s806_s23, %s640_s29 }
  0x19   : > { %551 = vmatpush3.bf16.msra.mxu0 %v627_v3  ;;  %p643_p1 = scmp.lt.s32.totalorder %s641_s30, %s635_s28 }
  0x1a   : > { %559 = vmatpush3.bf16.msra.mxu1 %v628_v4  ;;  %564 = vmatprep.subr.bf16.mxu0 %v697_v1 }
  0x1b   : > { %572 = vmatprep.subr.bf16.mxu1 %v697_v1  ;;  %p644_p2 = por %p643_p1, %p642_p0 }
  0x1c   : > { %553 = vmatmul.mubr.msk.bf16.vlgmr.msra.gmra.mxu0 %vm157_vm1, %v140_v5 }
  0x1d   : > { %561 = vmatmul.mubr.msk.bf16.vlgmr.msra.gmra.mxu1 %vm157_vm1, %v140_v5  ;;  %568 = vmatprep.mubr.msk.bf16.mxu0 %vm698_vm0, %v697_v1  ;;  %p645_p3 = pnand %p644_p2, %p638_p13 }
  0x1e   : > { %574 = vmatprep.mubr.msk.bf16.mxu1 %vm698_vm0, %v697_v1  ;;  %565 = vmatpush3.bf16.msra.mxu0 %v629_v18 }
  0x1f   : > { %566 = vmatprep.subr.bf16.mxu0 %v697_v1 }
  0x22   : > { %567 = vmatpush3.bf16.msra.mxu0 %v630_v19 }
  0x23   : > { %578 = vmatprep.subr.bf16.mxu0 %v697_v1 }
  0x25   : > { %569 = vmatmul.mubr.msk.bf16.vlgmr.msra.gmra.mxu0 %vm157_vm1, %v140_v5 }
  0x26   : > { %580 = vmatprep.mubr.msk.bf16.mxu0 %vm698_vm0, %v697_v1 }
  0xdc   : > { %v195_v6 = vpop.f32.mrf.mxu0 }
  0xdd   : > { %v317_v7 = vpack.c.bf16 %v195_v6, %v195_v6  ;;  %v252_v8 = vpop.f32.mrf.mxu1 }
  0xde   : > { %v554_v9 = vpop.f32.mrf.mxu0  ;;  %v315_v11 = vmul.f32 0.17677669, %v252_v8 }
  0xdf   : > { %v323_v10 = vsel %vm318_vm2, %v317_v7, 0  ;;  %v562_v12 = vpop.f32.mrf.mxu1 }
  0xe0   : > { %v198_v13 = vpop.f32.mrf.mxu0  ;;  %573 = vmatpush3.bf16.xpose.msra.mxu1 %v323_v10  ;;  %v316_v16 = vpack.c.bf16 %v315_v11, %v315_v11 }
  0xe1   : > { %v255_v14 = vpop.f32.mrf.mxu1 }
  0xe2   : > { %v555_v15 = vpop.f32.mrf.mxu0 }
  0xe3   : > { %v563_v17 = vpop.f32.mrf.mxu1 }
  0xe5   : > { %v309_v34 = vpop.f32.mrf.mxu0 }
  0xe6   : > { %v384_v35 = vpack.c.bf16 %v309_v34, %v309_v34 }
  0xe7   : > { %575 = vmatmul.mubr.msk.bf16.vlgmr.msra.gmra.mxu1 %vm318_vm2, %v316_v16  ;;  %v570_v36 = vpop.f32.mrf.mxu0 }
  0xe8   : > { %v390_v37 = vsel %vm388_vm5, %v384_v35, 0 }
  0xe9   : > { %v312_v38 = vpop.f32.mrf.mxu0  ;;  %579 = vmatpush3.bf16.msra.mxu0 %v390_v37 }
  0xeb   : > { %v571_v39 = vpop.f32.mrf.mxu0 }
 0x1a7   : > { %v359_v23 = vpop.f32.mrf.mxu1 }
 0x1a8   : > { %v370_v24 = vsel %vm369_vm3, %v359_v23, -inf }
 0x1a9   : > { %v576_v25 = vpop.f32.mrf.mxu1  ;;  %v372_v26 = vsel %vm371_vm4, %v370_v24, -inf }
 0x1aa   : > { %373 = vmax.xlane.f32.xlu0 %v372_v26 }
 0x1ab   : > { %v362_v27 = vpop.f32.mrf.mxu1 }
 0x1ad   : > { %v577_v28 = vpop.f32.mrf.mxu1 }
 0x233   : > { %v374_v29 = vpop.xlane.xlu0 %373 }
 0x234   : > { %v375_v30 = vsub.f32 %v370_v24, %v374_v29 }
 0x236   : > { %v376_v31 = vmul.f32 1.442695, %v375_v30 }
 0x238   : > { %631 = vpow2.f32 %v376_v31 }
 0x245   : > { %v632_v32 = vpop.eup %631 }
 0x246   : > { %v378_v33 = vsel %vm371_vm4, %v632_v32, 0.0 }
 0x247   : > { %379 = vadd.xlane.f32.xlu0 %v378_v33 }
 0x2d0   : > { %v380_v40 = vpop.xlane.xlu0 %379 }
 0x2d1   : > { %633 = vrcp.f32 %v380_v40 }
 0x2de   : > { %v634_v41 = vpop.eup %633 }
 0x2df   : > { %v382_v42 = vmul.f32 %v634_v41, %v632_v32 }
 0x2e1   : > { %v383_v43 = vpack.c.bf16 %v382_v42, %v382_v42 }
 0x2e3   : > { %581 = vmatmul.mubr.msk.bf16.vlgmr.msra.gmra.mxu0 %vm371_vm4, %v383_v43 }
 0x3a3   : > { %v426_v44 = vpop.f32.mrf.mxu0 }
 0x3a4   : > { %432 = vst.msk [vmem:[%s134_s22] sm:$0xff] %vm318_vm2, %v426_v44 }
 0x3a5   : > { %v582_v45 = vpop.f32.mrf.mxu0 }
 0x3a6   : > { %648 = shalt.err (!%p645_p3)
}
 0x3a7   : > { %s649_s3 = scalar_lea.hbm %s804_s26, 128  ;;  %s653_s6 = scalar_lea.hbm %s848_s2, 256 }
 0x3a8   : > { %p650_p4 = scmp.ne.s32.totalorder %s804_s26, %s649_s3  ;;  %p654_p9 = scmp.lt.s32.totalorder %s804_s26, %s848_s2 }
 0x3a9   : > { %p655_p10 = scmp.lt.s32.totalorder %s653_s6, %s649_s3 }
 0x3aa   : > { %p651_p7 = pnand %p650_p4, %p753_p5 }
 0x3ab   : > { %p656_p11 = por %p655_p10, %p654_p9 }
 0x3ac   : > { %p652_p8 = pneg %p651_p7 }
 0x3ae   : > { %p657_p12 = pnand %p656_p11, %p652_p8 }
 0x3b0   : > { %660 = shalt.err (!%p657_p12)
}
 0x3b1   : > { %584 = dma.vmem_to_hbm [thread:$0]  (%p753_p5), %s806_s23, 128, %s804_s26, %s434_s27   ;;  %v429_v46 = vpop.f32.mrf.mxu0 }
 0x3b3   : > { %v583_v47 = vpop.f32.mrf.mxu0 }
 0x3b4 PF: > { %p590_p13 = scmp.ge.s32.totalorder %s695_s12, 2  ;;  %s459_s14 = sand.u32 1, %s683_s9  }
 0x3b5   : > { %s460_s16 = scalar_lea.sflag [#allocation3], %s459_s14 }
 0x3b6   : > { %p587_p0 = pnand %p590_p13, %p757_p6 }
 0x3b8   : > { %p588_p1 = pneg %p587_p0 }
 0x3ba   : > { %678 = dma.done.wait (%p588_p1), %s460_s16, 128  }
 0x3bb   : > { %680 = vsyncadd (%p588_p1), %s460_s16, 4294967168  ;;  %p12_p5 = scmp.ge.s32.totalorder %s740_s15, 4   ;;  %s851_s9 = smov %s687_s10 }
 0x3bc   : > { %s852_s10 = smov %s691_s11  ;;  %s853_s11 = smov %s751_s18 }
 0x3bd   : > { %s854_s12 = smov %s740_s15  ;;  %14 = sbr.rel (!%p12_p5) target bundleno = 3 (0x3), region = 65 }
 0x3c2   :  { %465 = vsyncpa [#allocation3], 1 }
 0x3c3   :  { %467 = vsyncpa [#allocation3 + $0x1], 1 }

</bundles_post_ra>
